<compile_context>
chip_gen: v7x
topology: tpu7x:2x2x1
jax: 0.10.0
libtpu: 0.0.40
codegen_flags: <defaults>
</compile_context>

<pallas_src>
import functools

import jax
import jax.numpy as jnp
from jax import lax
from jax.experimental import pallas as pl
from jax.experimental.pallas import tpu as pltpu

_MIB = 1024 * 1024
_TARGET_BLOCK_BYTES = 2 * _MIB   # ~2 MiB input blocks amortize per-step overhead
_SUBLANES = 8                    # f32 sublanes per vreg


def _vmem_capacity_bytes(default=64 * _MIB):
    """Physical VMEM per core; conservative fallback (v7x = 64 MiB) if unknown."""
    try:
        info = pltpu.get_tpu_info()
        cap = getattr(info, "vmem_capacity_bytes", None)
        if cap:
            return int(cap)
    except Exception:
        pass
    return default


def _pick_hw_tile(hw, row_bytes, target_bytes):
    """Largest multiple-of-128 divisor of hw with row_bytes*tile <= target.
    Falls back to the full extent when hw is not a multiple of 128
    (BlockSpec full-dimension exception)."""
    if hw % 128 != 0:
        return hw
    if hw * row_bytes <= target_bytes:
        return hw
    max_lanes = max(128, (target_bytes // max(row_bytes, 1)) // 128 * 128)
    best = 128
    t = 128
    limit = min(hw, max_lanes)
    while t <= limit:
        if hw % t == 0:
            best = t
        t += 128
    return best


def _pick_nt(n, c, per_image_block_bytes, target_bytes):
    """Largest divisor of n folding images into the sublane axis while keeping
    blocks near the byte target (allow 2x target while filling sublanes)."""
    best = 1
    for nt in range(1, n + 1):
        if n % nt:
            continue
        blk = nt * per_image_block_bytes
        if blk <= target_bytes or (nt * c <= _SUBLANES and blk <= 2 * target_bytes):
            best = nt
    return best


# ----------------------------- kernels ---------------------------------------


def _bn_partial_stats_kernel(x_ref, psum_ref, psq_ref):
    # One streamed read; per-block lane reduce (XLU). Each grid point owns its
    # own output block, so both grid axes are "parallel" (no shared scratch).
    x = x_ref[0].astype(jnp.float32)                       # (CC, hw_tile)
    psum_ref[0] = jnp.sum(x, axis=-1, keepdims=True)       # (CC, 1)
    psq_ref[0] = jnp.sum(x * x, axis=-1, keepdims=True)    # (CC, 1)


def _bn_norm_kernel(x_ref, scale_ref, shift_ref, o_ref):
    # Fused per-element mul+add on the VPU; lane-dense read/write.
    x = x_ref[0].astype(jnp.float32)                       # (CC, hw_tile)
    o_ref[0] = (x * scale_ref[...] + shift_ref[...]).astype(o_ref.dtype)


def _bn_fused_kernel(x_ref, o_ref, *, eps, reduce_size):
    # Whole tensor resident in VMEM: stats + normalize with a single HBM
    # read and a single HBM write. Exact two-pass (mean then centered SS)
    # variance since the second pass is VMEM-only.
    x = x_ref[...].astype(jnp.float32)                     # (N, C, HW)
    s = jnp.sum(jnp.sum(x, axis=2, keepdims=True), axis=0, keepdims=True)   # (1, C, 1)
    mean = s / jnp.float32(reduce_size)
    d = x - mean
    ss = jnp.sum(jnp.sum(d * d, axis=2, keepdims=True), axis=0, keepdims=True)
    denom = jnp.float32(max(reduce_size - 1, 1))           # unbiased (torch.var default)
    var = jnp.maximum(ss / denom, 0.0)
    scale = lax.rsqrt(var + jnp.float32(eps))
    o_ref[...] = (d * scale).astype(o_ref.dtype)


# ----------------------------- wrapper ---------------------------------------


def batchnorm2d_v2(x, eps=1e-5, force_two_pass=False):
    """Training-mode BatchNorm2dV2 forward (affine=False). x: (N, C, H, W)."""
    n, c, h, w = x.shape
    hw = h * w
    m = n * hw
    itemsize = jnp.dtype(x.dtype).itemsize
    vmem_cap = _vmem_capacity_bytes()

    # ---- Fused single-pass path: whole tensor in VMEM (1 HBM read + 1 write).
    # Working set ~ in + out (x dtype) + ~2 f32 temps.
    working_bytes = n * c * hw * (2 * itemsize + 8)
    if not force_two_pass and working_bytes <= int(0.4 * vmem_cap):
        x3 = x.reshape(n, c, hw)                           # free view of NCHW
        fused_limit = int(min(vmem_cap - 4 * _MIB, max(32 * _MIB, 2 * working_bytes)))
        out3 = pl.pallas_call(
            functools.partial(_bn_fused_kernel, eps=eps, reduce_size=m),
            out_shape=jax.ShapeDtypeStruct((n, c, hw), x.dtype),
            compiler_params=pltpu.CompilerParams(vmem_limit_bytes=fused_limit),
        )(x3)
        return out3.reshape(n, c, h, w)

    # ---- Streaming two-pass path.
    row_bytes = c * itemsize
    hw_tile = _pick_hw_tile(hw, row_bytes, _TARGET_BLOCK_BYTES)
    hw_tile_padded = -(-hw_tile // 128) * 128              # lane-padded footprint
    nt = _pick_nt(n, c, row_bytes * hw_tile_padded, _TARGET_BLOCK_BYTES)
    nb = n // nt
    cc = nt * c
    nhw = hw // hw_tile
    nblocks = nb * nhw
    block_bytes = cc * hw_tile_padded * itemsize
    vmem_limit = int(min(vmem_cap - 4 * _MIB, max(32 * _MIB, 6 * block_bytes)))

    x_r = x.reshape(nb, cc, hw)                            # free view, no transpose
    grid = (nb, nhw)

    # Pass 1: per-block partial sums / sums-of-squares (one streamed read of x).
    psum, psq = pl.pallas_call(
        _bn_partial_stats_kernel,
        out_shape=(jax.ShapeDtypeStruct((nblocks, cc, 1), jnp.float32),
                   jax.ShapeDtypeStruct((nblocks, cc, 1), jnp.float32)),
        grid=grid,
        in_specs=[pl.BlockSpec((1, cc, hw_tile), lambda i, j: (i, 0, j))],
        out_specs=(pl.BlockSpec((1, cc, 1), lambda i, j: (i * nhw + j, 0, 0)),
                   pl.BlockSpec((1, cc, 1), lambda i, j: (i * nhw + j, 0, 0))),
        compiler_params=pltpu.CompilerParams(
            dimension_semantics=("parallel", "parallel"),
            vmem_limit_bytes=vmem_limit),
    )(x_r)

    # Tiny Chan-style combine + rsqrt in plain JAX (numerically robust merge
    # of per-block partials; O(nblocks*C) work on small arrays).
    p_sum = psum[:, :, 0].reshape(nblocks * nt, c)
    p_sq = psq[:, :, 0].reshape(nblocks * nt, c)
    n_p = jnp.float32(hw_tile)
    mu_p = p_sum / n_p
    m2_p = jnp.maximum(p_sq - p_sum * mu_p, 0.0)           # per-partial centered SS
    mean = jnp.sum(p_sum, axis=0) / jnp.float32(m)         # (C,)
    m2 = jnp.sum(m2_p, axis=0) + jnp.sum(n_p * (mu_p - mean[None, :]) ** 2, axis=0)
    denom = jnp.float32(max(m - 1, 1))                     # unbiased (torch.var default)
    var = jnp.maximum(m2 / denom, 0.0)
    scale_c = lax.rsqrt(var + jnp.float32(eps))
    shift_c = -mean * scale_c
    scale_cc = jnp.tile(scale_c, nt).reshape(cc, 1)        # broadcast per-channel -> folded rows
    shift_cc = jnp.tile(shift_c, nt).reshape(cc, 1)

    # Pass 2: out = x*scale + shift (one read + one lane-dense write, dual-TC parallel).
    out_r = pl.pallas_call(
        _bn_norm_kernel,
        out_shape=jax.ShapeDtypeStruct((nb, cc, hw), x.dtype),
        grid=grid,
        in_specs=[pl.BlockSpec((1, cc, hw_tile), lambda i, j: (i, 0, j)),
                  pl.BlockSpec((cc, 1), lambda i, j: (0, 0)),
                  pl.BlockSpec((cc, 1), lambda i, j: (0, 0))],
        out_specs=pl.BlockSpec((1, cc, hw_tile), lambda i, j: (i, 0, j)),
        compiler_params=pltpu.CompilerParams(
            dimension_semantics=("parallel", "parallel"),
            vmem_limit_bytes=vmem_limit),
    )(x_r, scale_cc, shift_cc)

    return out_r.reshape(n, c, h, w)


def _reference(x, eps=1e-5):
    # Pure-JAX reference matching the PyTorch training-mode forward
    # (torch.var default = unbiased, divisor M-1).
    mean = jnp.mean(x, axis=(0, 2, 3), keepdims=True)
    m = x.shape[0] * x.shape[2] * x.shape[3]
    var = jnp.sum((x - mean) ** 2, axis=(0, 2, 3), keepdims=True) / max(m - 1, 1)
    return (x - mean) / jnp.sqrt(var + eps)


# TODO(synk): eval-mode branch and running_mean/running_var momentum updates are
# not implemented (module defaults: training path with track_running_stats=False).

if __name__ == "__main__":
    key = jax.random.PRNGKey(0)
    n, c, h, w = 2, 4, 16, 16
    x = jax.random.normal(key, (n, c, h, w), dtype=jnp.float32)

    ref = _reference(x)

    # Fused VMEM-resident single-pass path (auto-selected for this small input).
    out_fused = jax.block_until_ready(batchnorm2d_v2(x))
    assert out_fused.shape == (n, c, h, w)
    assert jnp.allclose(out_fused, ref, atol=1e-4, rtol=1e-4), "fused path mismatch"

    # Streaming two-pass path (forced) so both code paths are exercised.
    out_tiled = jax.block_until_ready(batchnorm2d_v2(x, force_two_pass=True))
    assert out_tiled.shape == (n, c, h, w)
    assert jnp.allclose(out_tiled, ref, atol=1e-4, rtol=1e-4), "tiled path mismatch"

    print("KERNEL_OK")
</pallas_src>

<mosaic_0001>
module attributes {stable_mosaic.version = 11 : i64} {
  func.func @_bn_fused_kernel(%arg0: memref<2x4x256xf32, #tpu.memory_space<vmem>>, %arg1: memref<2x4x256xf32, #tpu.memory_space<vmem>>) attributes {dimension_semantics = [], scalar_prefetch = 0 : i64, scratch_operands = 0 : i64, tpu.core_type = #tpu.core_type<tc>} {
    %c0 = arith.constant 0 : index
    %c0_0 = arith.constant 0 : index
    %c0_1 = arith.constant 0 : index
    %0 = vector.load %arg0[%c0, %c0_0, %c0_1] : memref<2x4x256xf32, #tpu.memory_space<vmem>>, vector<2x4x256xf32>
    %cst = arith.constant dense<0.000000e+00> : vector<2x4xf32>
    %1 = vector.multi_reduction <add>, %0, %cst [2] : vector<2x4x256xf32> to vector<2x4xf32>
    %2 = vector.shape_cast %1 : vector<2x4xf32> to vector<2x4x1xf32>
    %cst_2 = arith.constant dense<0.000000e+00> : vector<4x1xf32>
    %3 = vector.multi_reduction <add>, %2, %cst_2 [0] : vector<2x4x1xf32> to vector<4x1xf32>
    %4 = vector.shape_cast %3 : vector<4x1xf32> to vector<1x4x1xf32>
    %cst_3 = arith.constant 5.120000e+02 : f32
    %5 = vector.broadcast %cst_3 : f32 to vector<1x4x1xf32>
    %6 = arith.divf %4, %5 : vector<1x4x1xf32>
    %7 = vector.broadcast %6 : vector<1x4x1xf32> to vector<2x4x256xf32>
    %8 = arith.subf %0, %7 : vector<2x4x256xf32>
    %9 = arith.mulf %8, %8 : vector<2x4x256xf32>
    %cst_4 = arith.constant dense<0.000000e+00> : vector<2x4xf32>
    %10 = vector.multi_reduction <add>, %9, %cst_4 [2] : vector<2x4x256xf32> to vector<2x4xf32>
    %11 = vector.shape_cast %10 : vector<2x4xf32> to vector<2x4x1xf32>
    %cst_5 = arith.constant dense<0.000000e+00> : vector<4x1xf32>
    %12 = vector.multi_reduction <add>, %11, %cst_5 [0] : vector<2x4x1xf32> to vector<4x1xf32>
    %13 = vector.shape_cast %12 : vector<4x1xf32> to vector<1x4x1xf32>
    %cst_6 = arith.constant 5.110000e+02 : f32
    %14 = vector.broadcast %cst_6 : f32 to vector<1x4x1xf32>
    %15 = arith.divf %13, %14 : vector<1x4x1xf32>
    %cst_7 = arith.constant 0.000000e+00 : f32
    %16 = vector.broadcast %cst_7 : f32 to vector<1x4x1xf32>
    %17 = arith.maximumf %15, %16 : vector<1x4x1xf32>
    %cst_8 = arith.constant 9.99999974E-6 : f32
    %18 = vector.broadcast %cst_8 : f32 to vector<1x4x1xf32>
    %19 = arith.addf %17, %18 : vector<1x4x1xf32>
    %20 = math.rsqrt %19 : vector<1x4x1xf32>
    %21 = vector.broadcast %20 : vector<1x4x1xf32> to vector<2x4x256xf32>
    %22 = arith.mulf %8, %21 : vector<2x4x256xf32>
    %c0_9 = arith.constant 0 : index
    %c0_10 = arith.constant 0 : index
    %c0_11 = arith.constant 0 : index
    %23 = vector.load %arg1[%c0_9, %c0_10, %c0_11] : memref<2x4x256xf32, #tpu.memory_space<vmem>>, vector<2x4x256xf32>
    tpu.vector_store %arg1[%c0_9, %c0_10, %c0_11], %22 {strides = array<i32>} : memref<2x4x256xf32, #tpu.memory_space<vmem>>, vector<2x4x256xf32>,
    return
  }
}

</mosaic_0001>

<bundles_post_ra>
// kernel: tpu_custom_call.1
= control target key start
LH: loop header
LB: loop body
LE: loop exit
PB: predicated region body
PF: predicated region fallthrough
CT: control target
= control target key end

     0   :  { %6 = vsyncpa [#allocation3], 0  ;;  %s228_s0 = inlined_call_operand.hbm [shape: f32[2,4,256], index: 0, kind: input, shape index: {}]   ;;  %s229_s1 = inlined_call_operand.hbm [shape: f32[2,4,256], index: 1, kind: output, shape index: {}]  }
   0x1   :  { %7 = vsyncpa [#allocation4], 0  ;;  %s171_s6 = smov [#allocation2]   ;;  %s123_s10 = scalar_lea.hbm %s228_s0, 256 }
   0x2   :  { %s13_s7 = sshll.u32 %s171_s6, 4  ;;  %p124_p0 = scmp.ne.s32.totalorder %s228_s0, %s123_s10  ;;  %s14_s7 = int_to_ptr.vmem [resolvable:$true] %s13_s7 }
   0x3   :  { %p127_p1 = scmp.lt.u32.totalorder %s123_s10, %s228_s0 }
   0x5   :  { %p129_p2 = pnand %p127_p1, %p124_p0 }
   0x7   :  { %132 = shalt.err (!%p129_p2)
}
   0x8   :  { %s133_s15 = scalar_lea.vmem %s14_s7, 256  ;;  %p138_p4 = scmp.lt.s32.totalorder %s14_s7, %s14_s7 }
   0x9   :  { %p134_p3 = scmp.ne.s32.totalorder %s14_s7, %s133_s15  ;;  %p139_p5 = scmp.lt.s32.totalorder %s133_s15, %s133_s15 }
   0xb   :  { %p140_p6 = por %p139_p5, %p138_p4 }
   0xd   :  { %p141_p7 = pnand %p140_p6, %p134_p3 }
   0xf   :  { %144 = shalt.err (!%p141_p7)
}
  0x10   :  { %s172_s16 = smov 128   ;;  %s173_s17 = smov 8  }
  0x11   :  { %19 = dma.hbm_to_vmem [thread:$0]  %s228_s0, 256, %s14_s7, [#allocation3], %s172_s16, %s172_s16, %s173_s17  }
  0x12   :  { %167 = dma.done.wait [#allocation3], 256  }
  0x13   :  { %168 = vsyncadd [#allocation3], 4294967040  ;;  %vm31_vm0 = vcmask 1043456   ;;  %v23_v0 = vld [vmem:[#allocation2] sm:$0xff]  ;;  %v24_v1 = vld [vmem:[#allocation2 + $0x8] sm:$0xff]  ;;  %v51_v12 = vlaneseq  ;;  %s175_s0 = smov [#allocation5]  }
  0x14   :  { %v27_v2 = vcombine.high %v23_v0, %v23_v0  ;;  %v32_v3 = vsel %vm31_vm0, %v23_v0, 0.0  ;;  %v28_v4 = vcombine.high %v24_v1, %v24_v1  ;;  %v37_v6 = vsel %vm31_vm0, %v24_v1, 0.0  ;;  %s102_s20 = sshll.u32 %s175_s0, 4  ;;  %s103_s20 = int_to_ptr.vmem [resolvable:$true] %s102_s20 }
  0x15   :  { %v174_v10 = vmov 839922192   ;;  %v52_v15 = vshrl.u32 %v51_v12, 7  ;;  %s145_s21 = scalar_lea.vmem %s103_s20, 256  ;;  %p150_p9 = scmp.lt.s32.totalorder %s103_s20, %s103_s20 }
  0x16   :  { %v33_v5 = vsel %vm31_vm0, %v27_v2, 0.0  ;;  %v38_v7 = vsel %vm31_vm0, %v28_v4, 0.0  ;;  %v49_v11 = vunpack.c.l.s4 %v174_v10  ;;  %p146_p8 = scmp.ne.s32.totalorder %s103_s20, %s145_s21  ;;  %p151_p10 = scmp.lt.s32.totalorder %s145_s21, %s145_s21 }
  0x17   :  { %v34_v8 = vadd.f32 %v33_v5, %v32_v3  ;;  %v39_v9 = vadd.f32 %v38_v7, %v37_v6 }
  0x18   :  { %v50_v14 = vunpack.c.0.s8 %v49_v11  ;;  %p152_p11 = por %p151_p10, %p150_p9 }
  0x19   :  { %35 = vadd.xlane.f32.xlu0 %v34_v8 }
  0x1a   :  { %v53_v19 = vsub.s32 %v50_v14, %v52_v15  ;;  %p153_p12 = pnand %p152_p11, %p146_p8 }
  0x1d   :  { %40 = vadd.xlane.f32.xlu0 %v39_v9 }
  0xa6   :  { %v36_v13 = vpop.xlane.xlu0 %35 }
  0xa7   :  { %v42_v17 = vsel %vm31_vm0, %v36_v13, 0.0 }
  0xaa   :  { %v41_v16 = vpop.xlane.xlu0 %40 }
  0xab   :  { %v43_v18 = vsel %vm31_vm0, %v41_v16, 0.0 }
  0xac   :  { %v44_v20 = vadd.f32 %v43_v18, %v42_v17 }
  0xae   :  { %v46_v21 = vmul.f32 0.001953125, %v44_v20 }
  0xb0   :  { %v54_v22 = vrot.slane %v46_v21, %v53_v19 }
  0xb2   :  { %v57_v23 = vsub.f32 %v24_v1, %v54_v22  ;;  %v56_v24 = vsub.f32 %v23_v0, %v54_v22 }
  0xb4   :  { %v58_v25 = vmul.f32 %v56_v24, %v56_v24  ;;  %v59_v26 = vmul.f32 %v57_v23, %v57_v23 }
  0xb6   :  { %v62_v27 = vcombine.high %v58_v25, %v58_v25  ;;  %v63_v28 = vcombine.high %v59_v26, %v59_v26  ;;  %v66_v29 = vsel %vm31_vm0, %v58_v25, 0.0  ;;  %v71_v33 = vsel %vm31_vm0, %v59_v26, 0.0 }
  0xb8   :  { %v67_v30 = vsel %vm31_vm0, %v62_v27, 0.0  ;;  %v72_v32 = vsel %vm31_vm0, %v63_v28, 0.0 }
  0xb9   :  { %v68_v31 = vadd.f32 %v67_v30, %v66_v29  ;;  %v73_v34 = vadd.f32 %v72_v32, %v71_v33 }
  0xbb   :  { %69 = vadd.xlane.f32.xlu1 %v68_v31 }
  0xbf   :  { %74 = vadd.xlane.f32.xlu1 %v73_v34 }
 0x148   :  { %v70_v35 = vpop.xlane.xlu1 %69 }
 0x149   :  { %v76_v37 = vsel %vm31_vm0, %v70_v35, 0.0 }
 0x14c   :  { %v75_v36 = vpop.xlane.xlu1 %74 }
 0x14d   :  { %v77_v38 = vsel %vm31_vm0, %v75_v36, 0.0 }
 0x14e   :  { %v78_v39 = vadd.f32 %v77_v38, %v76_v37 }
 0x150   :  { %v80_v40 = vmul.f32 0.0019569471, %v78_v39 }
 0x152   :  { %v81_v41 = vmax.f32 %v80_v40, 0.0 }
 0x154   :  { %v82_v42 = vadd.f32 1e-05, %v81_v41 }
 0x156   :  { %121 = vrsqrt.f32 %v82_v42 }
 0x160   :  { %v122_v43 = vpop.eup %121 }
 0x161   :  { %v91_v44 = vrot.slane %v122_v43, %v53_v19 }
 0x163   :  { %v93_v45 = vmul.f32 %v91_v44, %v56_v24  ;;  %v94_v46 = vmul.f32 %v91_v44, %v57_v23 }
 0x165   :  { %95 = vst [vmem:[#allocation5] sm:$0xff] %v93_v45  ;;  %96 = vst [vmem:[#allocation5 + $0x8] sm:$0xff] %v94_v46 }
 0x166   :  { %156 = shalt.err (!%p153_p12)
}
 0x167   :  { %s157_s24 = scalar_lea.hbm %s229_s1, 256 }
 0x168   :  { %p158_p13 = scmp.ne.s32.totalorder %s229_s1, %s157_s24  ;;  %p161_p0 = scmp.lt.u32.totalorder %s157_s24, %s229_s1 }
 0x16a   :  { %p163_p1 = pnand %p161_p0, %p158_p13 }
 0x16c   :  { %166 = shalt.err (!%p163_p1)
}
 0x16d   :  { %108 = dma.vmem_to_hbm [thread:$0]  %s103_s20, 256, %s229_s1, [#allocation4], %s172_s16, %s172_s16, %s173_s17  }
 0x16e   :  { %169 = dma.done.wait [#allocation4], 256  }
 0x16f   :  { %170 = vsyncadd [#allocation4], 4294967040 }
 0x170   :  { %112 = vsyncpa [#allocation3], 1 }
 0x171   :  { %113 = vsyncpa [#allocation4], 1 }

</bundles_post_ra>
